<compile_context>
chip_gen: v7x
topology: tpu7x:2x2x1
jax: 0.10.0
libtpu: 0.0.40
codegen_flags: <defaults>
</compile_context>

<pallas_src>
import functools

import jax
import jax.numpy as jnp
from jax.experimental import pallas as pl
from jax.experimental.pallas import tpu as pltpu

VMEM = pltpu.MemorySpace.VMEM
SMEM = pltpu.MemorySpace.SMEM


# ---------------------------------------------------------------------------
# Kernel 1: tiled   per-column partials of sum(matinv.T * symmat)  +  Ndiag  +  N[:, -1]
# ---------------------------------------------------------------------------
def _make_loss_kernel(rbi, rbj, tot_n):
    j_last = (tot_n - 1) // rbj          # row-block holding matinv's last *real* row
    lr = (tot_n - 1) % rbj               # its local row offset inside that block

    def kernel(matinv_ref, symmat_ref, psumv_ref, ndiag_ref, nlcol_ref):
        i = pl.program_id(0)             # column-block of matinv == output segment (parallel)
        j = pl.program_id(1)             # row-block of matinv    == reduction axis (arbitrary)
        mblk = matinv_ref[...]           # (rbj, rbi) = matinv[j-block rows, i-block cols]
        sblk = symmat_ref[...]           # (rbi, rbj) = symmat[i-block rows, j-block cols]

        @pl.when(j == 0)
        def _init():
            psumv_ref[...] = jnp.zeros_like(psumv_ref)

        # Exact per-tile contribution to sum(matinv.T * symmat), offloaded to the MXU:
        #   diag(sblk @ mblk)[q] = sum_p symmat[i*rbi+q, j*rbj+p] * matinv[j*rbj+p, i*rbi+q]
        d = jnp.dot(sblk, mblk, preferred_element_type=jnp.float32)      # (rbi, rbi)
        dr = jax.lax.broadcasted_iota(jnp.int32, (rbi, rbi), 0)
        dc = jax.lax.broadcasted_iota(jnp.int32, (rbi, rbi), 1)
        psumv_ref[...] += jnp.sum(jnp.where(dr == dc, d, 0.0), axis=0, keepdims=True)

        # Ndiag segment: the diag entries for columns [i*rbi, (i+1)*rbi) live in exactly one
        # row-block (rbj % rbi == 0); extract them with a global-index mask (runs once per i).
        row0 = i * rbi
        @pl.when(jnp.logical_and(row0 >= j * rbj, row0 < (j + 1) * rbj))
        def _diag():
            rg = j * rbj + jax.lax.broadcasted_iota(jnp.int32, (rbj, rbi), 0)
            cg = row0 + jax.lax.broadcasted_iota(jnp.int32, (rbj, rbi), 1)
            ndiag_ref[...] = -jnp.sum(jnp.where(rg == cg, mblk, 0.0), axis=0, keepdims=True)

        # N[:, -1] segment == -matinv[tot_n-1, i-block]  (last *real* row, padding-aware).
        @pl.when(j == j_last)
        def _lastrow():
            nlcol_ref[...] = -mblk[lr:lr + 1, :]

    return kernel


def _pick_tiles(tot_n):
    tot_pad = ((tot_n + 127) // 128) * 128   # pad to a lane multiple -> keeps the pipelined path
    rbi = 128                                # 128 output lanes per i-block: MXU-trace stays under
    rbj = 128                                # the HBM roofline on v7x (flops/byte = rbi/4)
    for cand in (2048, 1024, 512, 256):
        if tot_pad % cand == 0:
            rbj = cand
            break
    return tot_pad, rbi, rbj


def _loss_diag_lastcol(matinv, symmat, tot_n, tot_pad, rbi, rbj):
    g_i = tot_pad // rbi
    g_j = tot_pad // rbj
    return pl.pallas_call(
        _make_loss_kernel(rbi, rbj, tot_n),
        out_shape=(jax.ShapeDtypeStruct((1, tot_pad), jnp.float32),   # per-column psum partials
                   jax.ShapeDtypeStruct((1, tot_pad), jnp.float32),   # diag(N)  (lane-dense)
                   jax.ShapeDtypeStruct((1, tot_pad), jnp.float32)),  # N[:, -1] (lane-dense)
        grid=(g_i, g_j),
        in_specs=[pl.BlockSpec((rbj, rbi), lambda i, j: (j, i)),      # matinv: rows j-blk, cols i-blk
                  pl.BlockSpec((rbi, rbj), lambda i, j: (i, j))],     # symmat: rows i-blk, cols j-blk
        out_specs=(pl.BlockSpec((1, rbi), lambda i, j: (0, i)),
                   pl.BlockSpec((1, rbi), lambda i, j: (0, i)),
                   pl.BlockSpec((1, rbi), lambda i, j: (0, i))),
        compiler_params=pltpu.CompilerParams(
            # every output block depends only on i -> i can be sharded across TensorCores;
            # j is the revisit/reduction axis.
            dimension_semantics=("parallel", "arbitrary"),
            vmem_limit_bytes=32 * 1024 * 1024),
    )(matinv, symmat)


# ---------------------------------------------------------------------------
# Kernel 2: single fused launch for ALL gradients + loss + s.grad
# ---------------------------------------------------------------------------
def _make_grads_kernel(shapes, tot_n):
    shapes = tuple(shapes)
    G = len(shapes) - 1          # gamma groups
    L = len(shapes) - 2          # hidden (lbda / nu / eta) layers

    def kernel(*refs):
        it = iter(refs)
        psumv_ref = next(it)                        # (1, tot_pad)  per-column psum partials
        ndiag_ref = next(it)                        # (1, tot_pad)  == diag(N)
        nlcol_ref = next(it)                        # (1, tot_pad)  == N[:, -1]
        scal_ref = next(it)                         # SMEM (2,):  [s, t]
        gamma_refs = [next(it) for _ in range(G)]   # (1, shapes[i]) each
        l_refs = [next(it) for _ in range(G)]
        u_refs = [next(it) for _ in range(G)]
        wt_refs = [next(it) for _ in range(L)]      # (k, m)  == Ws[i].T (pre-transposed in wrapper)
        nblk_refs = [next(it) for _ in range(L)]    # (k, m)  == matinv[preptr:ptr, ptr:ptr+m]
        b_refs = [next(it) for _ in range(L)]       # (1, m)
        nu_refs = [next(it) for _ in range(L)]
        eta_refs = [next(it) for _ in range(L)]
        gamma_outs = [next(it) for _ in range(G)]   # (1, shapes[i]) each
        lbda_outs = [next(it) for _ in range(L)]
        nu_outs = [next(it) for _ in range(L)]
        eta_outs = [next(it) for _ in range(L)]
        scal_out = next(it)                         # (1, 2): [loss, s.grad]

        s = scal_ref[0]
        t = scal_ref[1]
        # use_det=False path: sgn = +1.0
        # TODO(synk): use_det=True branch (torch.symeig max-eigenvalue sign check) not implemented.
        inv_t = 1.0 / t          # NOTE: t == 0 (module init) would inf/nan, exactly like torch.
        nlast = nlcol_ref[0:1, tot_n - 1:tot_n]     # (1,1) == N[-1, -1]

        # loss = s*t + sum(-matinv.T * symmat)   (padded lanes of psumv are exactly zero)
        psum = jnp.sum(psumv_ref[...], keepdims=True)                     # (1, 1)
        scal_out[:, 0:1] = s * t - psum
        # s.grad = (-trace(N) + t) / t, clamped at 1.0   (padded lanes of ndiag are zero)
        tr_n = jnp.sum(ndiag_ref[...], keepdims=True)
        scal_out[:, 1:2] = jnp.minimum((t - tr_n) * inv_t, 1.0)

        # ---- gamma grads per feature group (static unrolled, each output lane-aligned) ----
        off = 0
        for gi in range(G):
            n_i = shapes[gi]
            nd = ndiag_ref[0:1, off:off + n_i]
            nc = nlcol_ref[0:1, off:off + n_i]
            lo = l_refs[gi][...]
            up = u_refs[gi][...]
            raw = -2.0 * nd + 2.0 * (lo + up) * nc - 2.0 * (lo * up) * nlast
            gamma_outs[gi][...] = jnp.where(gamma_refs[gi][...] > 0.0, raw, 0.0) * inv_t
            off += n_i

        # ---- lambda / nu / eta grads per hidden layer (static unrolled) ----
        ptr = 0
        for layer in range(L):
            k = shapes[layer]
            m = shapes[layer + 1]
            preptr = ptr
            ptr = ptr + k
            wt = wt_refs[layer][...]                 # (k, m)
            nb = nblk_refs[layer][...]               # (k, m)
            b = b_refs[layer][...]                   # (1, m)
            ncol_in = nlcol_ref[0:1, preptr:ptr]     # (1, k) == N[preptr:ptr, -1]
            ncol_out = nlcol_ref[0:1, ptr:ptr + m]   # (1, m) == N[ptr:ptr+m, -1]
            nd_out = ndiag_ref[0:1, ptr:ptr + m]     # (1, m)

            # 2*(W * N_blk).sum(-1)  ==  -2 * sum_k W.T[k,j] * matinv_blk[k,j]
            lbda_outs[layer][...] = (-2.0 * jnp.sum(wt * nb, axis=0, keepdims=True)
                                     + 2.0 * b * ncol_out
                                     - 2.0 * nd_out) * inv_t

            # (W @ N[preptr:ptr, -1])^T  ==  ncol_in @ W.T   (MXU, no in-kernel transpose)
            wn = jnp.dot(ncol_in, wt, preferred_element_type=jnp.float32)   # (1, m)
            nu_raw = -2.0 * wn + 2.0 * ncol_out - 2.0 * b * nlast
            nu_outs[layer][...] = jnp.where(nu_refs[layer][...] > 0.0, nu_raw, 0.0) * inv_t

            eta_outs[layer][...] = jnp.where(eta_refs[layer][...] > 0.0,
                                             2.0 * ncol_out, 0.0) * inv_t

    return kernel


# ---------------------------------------------------------------------------
# Forward (method='direct', use_det=False)
# ---------------------------------------------------------------------------
@functools.partial(jax.jit, static_argnums=(0,))
def _forward_impl(shapes, matinv, symmat, s, t, gammas, nus, etas, ls, us, Ws, bs):
    shapes = list(shapes)
    G = len(shapes) - 1
    L = len(shapes) - 2
    tot_n = sum(shapes[:-1]) + 1
    f32 = jnp.float32

    matinv = matinv.astype(f32)
    symmat = symmat.astype(f32)

    # Launch 1: streaming sweep (zero-pad to a lane multiple to keep the tiled pipelined path).
    tot_pad, rbi, rbj = _pick_tiles(tot_n)
    if tot_pad != tot_n:
        pad = tot_pad - tot_n
        matinv_p = jnp.pad(matinv, ((0, pad), (0, pad)))
        symmat_p = jnp.pad(symmat, ((0, pad), (0, pad)))
    else:
        matinv_p, symmat_p = matinv, symmat
    psumv, ndiag, nlcol = _loss_diag_lastcol(matinv_p, symmat_p, tot_n, tot_pad, rbi, rbj)

    # Launch 2: all gradients + loss + s.grad in one fused kernel.
    # Only the small per-layer cross blocks of matinv are passed (static slices, tiny), never the
    # full matrix; W is passed pre-transposed so the kernel does no XLU transposes.
    scal = jnp.stack([jnp.asarray(s, f32), jnp.asarray(t, f32)])
    args = [psumv, ndiag, nlcol, scal]
    args += [gammas[i].reshape(1, -1).astype(f32) for i in range(G)]
    args += [ls[i].reshape(1, -1).astype(f32) for i in range(G)]
    args += [us[i].reshape(1, -1).astype(f32) for i in range(G)]
    wts, nblks = [], []
    ptr = 0
    for li in range(L):
        k = shapes[li]
        m = shapes[li + 1]
        preptr = ptr
        ptr += k
        wts.append(jnp.transpose(Ws[li].astype(f32)))        # (k, m): one-time XLA transpose
        nblks.append(matinv[preptr:ptr, ptr:ptr + m])        # (k, m): static cross block only
    args += wts
    args += nblks
    args += [bs[i].reshape(1, -1).astype(f32) for i in range(L)]
    args += [nus[i].reshape(1, -1).astype(f32) for i in range(L)]
    args += [etas[i].reshape(1, -1).astype(f32) for i in range(L)]

    vspec = pl.BlockSpec(memory_space=VMEM)
    in_specs = ([vspec, vspec, vspec, pl.BlockSpec(memory_space=SMEM)]
                + [vspec] * (3 * G + 5 * L))
    out_shape = ([jax.ShapeDtypeStruct((1, shapes[i]), f32) for i in range(G)]        # gamma
                 + [jax.ShapeDtypeStruct((1, shapes[i + 1]), f32) for i in range(L)]  # lbda
                 + [jax.ShapeDtypeStruct((1, shapes[i + 1]), f32) for i in range(L)]  # nu
                 + [jax.ShapeDtypeStruct((1, shapes[i + 1]), f32) for i in range(L)]  # eta
                 + [jax.ShapeDtypeStruct((1, 2), f32)])                               # [loss, s.grad]

    outs = pl.pallas_call(
        _make_grads_kernel(tuple(shapes), tot_n),
        out_shape=tuple(out_shape),
        in_specs=in_specs,
        out_specs=tuple([vspec] * len(out_shape)),
        compiler_params=pltpu.CompilerParams(vmem_limit_bytes=32 * 1024 * 1024),
    )(*args)

    gamma_grads = [outs[i][0] for i in range(G)]
    lbda_grads = [outs[G + i][0] for i in range(L)]
    nu_grads = [outs[G + L + i][0] for i in range(L)]
    eta_grads = [outs[G + 2 * L + i][0] for i in range(L)]
    sc = outs[G + 3 * L]
    loss = sc[0, 0]
    s_grad = sc[0, 1]

    grads = {'gammas': gamma_grads, 'lbdas': lbda_grads, 'nus': nu_grads,
             'etas': eta_grads, 's': s_grad}
    return loss, grads


def point_verifier_forward(params, matinv, symmat):
    return _forward_impl(tuple(params['shapes']), matinv, symmat,
                         params['s'], params['t'],
                         params['gammas'], params['nus'], params['etas'],
                         params['l'], params['u'], params['Ws'], params['bs'])


# ---------------------------------------------------------------------------
# Pure-JAX reference (mirrors the torch code) for a correctness check
# ---------------------------------------------------------------------------
def _reference_forward(p, matinv, symmat):
    shapes, t, s = p['shapes'], p['t'], p['s']
    N = -matinv.T
    inv_ts = 1.0 / t
    loss = s * t + jnp.sum(-matinv.T * symmat)
    gamma_grads, ptr = [], 0
    for i in range(len(p['gammas'])):
        preptr = ptr; ptr += shapes[i]
        g = (-2.0 * jnp.diagonal(N)[preptr:ptr]
             + 2.0 * (p['l'][i] + p['u'][i]) * N[preptr:ptr, -1]
             - 2.0 * (p['l'][i] * p['u'][i]) * N[-1, -1])
        gamma_grads.append(g * (p['gammas'][i] > 0) * inv_ts)
    lbda_grads, nu_grads, eta_grads, ptr = [], [], [], 0
    for i in range(len(p['lbdas'])):
        preptr = ptr; ptr += shapes[i]
        m = shapes[i + 1]
        lg = (2.0 * (p['Ws'][i] * N[ptr:ptr + m, preptr:ptr]).sum(-1)
              + 2.0 * p['bs'][i] * N[ptr:ptr + m, -1]
              - 2.0 * jnp.diagonal(N)[ptr:ptr + m])
        ng = (-2.0 * (p['Ws'][i] @ N[preptr:ptr, -1])
              + 2.0 * N[ptr:ptr + m, -1]
              - 2.0 * p['bs'][i] * N[-1, -1]) * (p['nus'][i] > 0)
        eg = 2.0 * N[ptr:ptr + m, -1] * (p['etas'][i] > 0)
        lbda_grads.append(lg * inv_ts)
        nu_grads.append(ng * inv_ts)
        eta_grads.append(eg * inv_ts)
    s_grad = jnp.minimum((-jnp.trace(N) + t) * inv_ts, 1.0)
    return loss, {'gammas': gamma_grads, 'lbdas': lbda_grads, 'nus': nu_grads,
                  'etas': eta_grads, 's': s_grad}


if __name__ == "__main__":
    key = jax.random.PRNGKey(0)
    keys = jax.random.split(key, 16)

    # model: Flatten -> Linear(32,16) -> ReLU -> Linear(16,8)   (num_layers=4, even)
    in_shape = (2, 4, 4)                                         # C, H, W
    shapes = [in_shape[0] * in_shape[1] * in_shape[2], 16, 8]    # [32, 16, 8]
    tot_n = sum(shapes[:-1]) + 1                                 # 49

    f32 = jnp.float32
    Ws = [jax.random.normal(keys[0], (shapes[1], shapes[0]), f32) * 0.1,
          jax.random.normal(keys[1], (shapes[2], shapes[1]), f32) * 0.1]
    bs = [jax.random.normal(keys[2], (shapes[1],), f32) * 0.1,
          jax.random.normal(keys[3], (shapes[2],), f32) * 0.1]
    gammas = [jnp.abs(jax.random.normal(keys[4], (shapes[0],), f32)) / shapes[0],
              jnp.abs(jax.random.normal(keys[5], (shapes[1],), f32)) / shapes[1]]
    lbdas = [jax.random.normal(keys[6], (shapes[1],), f32) / shapes[1]]
    nus = [jnp.abs(jax.random.normal(keys[7], (shapes[1],), f32)) / shapes[1]]
    etas = [jnp.abs(jax.random.normal(keys[8], (shapes[1],), f32)) / shapes[1]]
    l = [-jnp.abs(jax.random.normal(keys[9], (shapes[0],), f32)),
         -jnp.abs(jax.random.normal(keys[10], (shapes[1],), f32))]
    u = [jnp.abs(jax.random.normal(keys[11], (shapes[0],), f32)),
         jnp.abs(jax.random.normal(keys[12], (shapes[1],), f32))]
    matinv = jax.random.normal(keys[13], (tot_n, tot_n), f32)
    symmat = jax.random.normal(keys[14], (tot_n, tot_n), f32)

    params = dict(shapes=shapes, Ws=Ws, bs=bs, gammas=gammas, lbdas=lbdas,
                  nus=nus, etas=etas, l=l, u=u,
                  s=jnp.float32(0.0),   # module __init__ value
                  t=jnp.float32(2.0))   # t is set externally in real use (init 0.0 would divide by zero)

    loss, grads = point_verifier_forward(params, matinv, symmat)
    jax.block_until_ready(loss)
    for v in jax.tree_util.tree_leaves(grads):
        jax.block_until_ready(v)

    # correctness check against pure-JAX reference
    ref_loss, ref_grads = _reference_forward(params, matinv, symmat)
    # the loss reduces tot_n^2 products via the MXU (f32 multi-pass contraction); allow a slightly
    # looser tolerance than the elementwise-f32 reference (the torch reference is float64 anyway).
    assert jnp.allclose(loss, ref_loss, rtol=1e-2, atol=1e-1)
    assert jnp.allclose(grads['s'], ref_grads['s'], rtol=2e-3, atol=2e-3)
    for name in ('gammas', 'lbdas', 'nus', 'etas'):
        for a, b in zip(grads[name], ref_grads[name]):
            assert jnp.allclose(a, b, rtol=2e-3, atol=2e-3), name

    print("KERNEL_OK")
</pallas_src>

<mosaic_0001>
module attributes {stable_mosaic.version = 11 : i64} {
  func.func @kernel(%arg0: i32, %arg1: i32, %arg2: memref<128x128xf32, #tpu.memory_space<vmem>>, %arg3: memref<128x128xf32, #tpu.memory_space<vmem>>, %arg4: memref<1x128xf32, #tpu.memory_space<vmem>>, %arg5: memref<1x128xf32, #tpu.memory_space<vmem>>, %arg6: memref<1x128xf32, #tpu.memory_space<vmem>>) attributes {dimension_semantics = [#tpu.dimension_semantics<parallel>, #tpu.dimension_semantics<arbitrary>], iteration_bounds = array<i64: 1, 1>, scalar_prefetch = 0 : i64, scratch_operands = 0 : i64, tpu.core_type = #tpu.core_type<tc>, window_params = [{transform_indices = @transform_0, window_bounds = array<i64: 128, 128>}, {transform_indices = @transform_1, window_bounds = array<i64: 128, 128>}, {transform_indices = @transform_2, window_bounds = array<i64: 1, 128>}, {transform_indices = @transform_3, window_bounds = array<i64: 1, 128>}, {transform_indices = @transform_4, window_bounds = array<i64: 1, 128>}]} {
    %c0 = arith.constant 0 : index
    %c0_0 = arith.constant 0 : index
    %0 = vector.load %arg2[%c0, %c0_0] : memref<128x128xf32, #tpu.memory_space<vmem>>, vector<128x128xf32>
    %c0_1 = arith.constant 0 : index
    %c0_2 = arith.constant 0 : index
    %1 = vector.load %arg3[%c0_1, %c0_2] : memref<128x128xf32, #tpu.memory_space<vmem>>, vector<128x128xf32>
    %c0_i32 = arith.constant 0 : i32
    %2 = arith.cmpi eq, %arg1, %c0_i32 : i32
    %3 = arith.extui %2 : i1 to i32
    %c0_i32_3 = arith.constant 0 : i32
    %4 = arith.cmpi ne, %3, %c0_i32_3 : i32
    scf.if %4 {
      %cst_15 = arith.constant 0.000000e+00 : f32
      %28 = vector.broadcast %cst_15 : f32 to vector<1x128xf32>
      %c0_16 = arith.constant 0 : index
      %c0_17 = arith.constant 0 : index
      %29 = vector.load %arg4[%c0_16, %c0_17] : memref<1x128xf32, #tpu.memory_space<vmem>>, vector<1x128xf32>
      tpu.vector_store %arg4[%c0_16, %c0_17], %28 {strides = array<i32>} : memref<1x128xf32, #tpu.memory_space<vmem>>, vector<1x128xf32>,
    } else {
    }
    %cst = arith.constant dense<0.000000e+00> : vector<128x128xf32>
    %5 = tpu.matmul %1, %0, %cst {dimension_numbers = #tpu.dot_dimension_numbers<[1], [0], [0], [1], [0, 0, 1, 1], [], []>} : vector<128x128xf32>, vector<128x128xf32>, vector<128x128xf32> -> vector<128x128xf32>
    %6 = tpu.iota {dimensions = array<i32: 0>} : vector<128x128xi32>
    %7 = tpu.iota {dimensions = array<i32: 1>} : vector<128x128xi32>
    %c0_4 = arith.constant 0 : index
    %c0_5 = arith.constant 0 : index
    %8 = vector.load %arg4[%c0_4, %c0_5] : memref<1x128xf32, #tpu.memory_space<vmem>>, vector<1x128xf32>
    %9 = arith.cmpi eq, %6, %7 : vector<128x128xi32>
    %cst_6 = arith.constant 0.000000e+00 : f32
    %10 = vector.broadcast %cst_6 : f32 to vector<128x128xf32>
    %11 = arith.select %9, %5, %10 : vector<128x128xi1>, vector<128x128xf32>
    %cst_7 = arith.constant dense<0.000000e+00> : vector<128xf32>
    %12 = vector.multi_reduction <add>, %11, %cst_7 [0] : vector<128x128xf32> to vector<128xf32>
    %13 = vector.shape_cast %12 : vector<128xf32> to vector<1x128xf32>
    %14 = arith.addf %8, %13 : vector<1x128xf32>
    %c0_8 = arith.constant 0 : index
    %c0_9 = arith.constant 0 : index
    %15 = vector.load %arg4[%c0_8, %c0_9] : memref<1x128xf32, #tpu.memory_space<vmem>>, vector<1x128xf32>
    tpu.vector_store %arg4[%c0_8, %c0_9], %14 {strides = array<i32>} : memref<1x128xf32, #tpu.memory_space<vmem>>, vector<1x128xf32>,
    %c128_i32 = arith.constant 128 : i32
    %16 = arith.muli %arg0, %c128_i32 : i32
    %c128_i32_10 = arith.constant 128 : i32
    %17 = arith.muli %arg1, %c128_i32_10 : i32
    %18 = arith.cmpi sge, %16, %17 : i32
    %c1_i32 = arith.constant 1 : i32
    %19 = arith.addi %arg1, %c1_i32 : i32
    %c128_i32_11 = arith.constant 128 : i32
    %20 = arith.muli %19, %c128_i32_11 : i32
    %21 = arith.cmpi slt, %16, %20 : i32
    %22 = arith.andi %18, %21 : i1
    %23 = arith.extui %22 : i1 to i32
    %c0_i32_12 = arith.constant 0 : i32
    %24 = arith.cmpi ne, %23, %c0_i32_12 : i32
    scf.if %24 {
      %c128_i32_15 = arith.constant 128 : i32
      %28 = arith.muli %arg1, %c128_i32_15 : i32
      %29 = tpu.iota {dimensions = array<i32: 0>} : vector<128x128xi32>
      %30 = vector.broadcast %28 : i32 to vector<128x128xi32>
      %31 = arith.addi %30, %29 : vector<128x128xi32>
      %32 = tpu.iota {dimensions = array<i32: 1>} : vector<128x128xi32>
      %33 = vector.broadcast %16 : i32 to vector<128x128xi32>
      %34 = arith.addi %33, %32 : vector<128x128xi32>
      %35 = arith.cmpi eq, %31, %34 : vector<128x128xi32>
      %cst_16 = arith.constant 0.000000e+00 : f32
      %36 = vector.broadcast %cst_16 : f32 to vector<128x128xf32>
      %37 = arith.select %35, %0, %36 : vector<128x128xi1>, vector<128x128xf32>
      %cst_17 = arith.constant dense<0.000000e+00> : vector<128xf32>
      %38 = vector.multi_reduction <add>, %37, %cst_17 [0] : vector<128x128xf32> to vector<128xf32>
      %39 = vector.shape_cast %38 : vector<128xf32> to vector<1x128xf32>
      %cst_18 = arith.constant 0.000000e+00 : f32
      %40 = vector.broadcast %cst_18 : f32 to vector<1x128xf32>
      %41 = arith.subf %40, %39 : vector<1x128xf32>
      %c0_19 = arith.constant 0 : index
      %c0_20 = arith.constant 0 : index
      %42 = vector.load %arg5[%c0_19, %c0_20] : memref<1x128xf32, #tpu.memory_space<vmem>>, vector<1x128xf32>
      tpu.vector_store %arg5[%c0_19, %c0_20], %41 {strides = array<i32>} : memref<1x128xf32, #tpu.memory_space<vmem>>, vector<1x128xf32>,
    } else {
    }
    %c0_i32_13 = arith.constant 0 : i32
    %25 = arith.cmpi eq, %arg1, %c0_i32_13 : i32
    %26 = arith.extui %25 : i1 to i32
    %c0_i32_14 = arith.constant 0 : i32
    %27 = arith.cmpi ne, %26, %c0_i32_14 : i32
    scf.if %27 {
      %28 = vector.extract_strided_slice %0 {offsets = [48, 0], sizes = [1, 128], strides = [1, 1]} : vector<128x128xf32> to vector<1x128xf32>
      %cst_15 = arith.constant 0.000000e+00 : f32
      %29 = vector.broadcast %cst_15 : f32 to vector<1x128xf32>
      %30 = arith.subf %29, %28 : vector<1x128xf32>
      %c0_16 = arith.constant 0 : index
      %c0_17 = arith.constant 0 : index
      %31 = vector.load %arg6[%c0_16, %c0_17] : memref<1x128xf32, #tpu.memory_space<vmem>>, vector<1x128xf32>
      tpu.vector_store %arg6[%c0_16, %c0_17], %30 {strides = array<i32>} : memref<1x128xf32, #tpu.memory_space<vmem>>, vector<1x128xf32>,
    } else {
    }
    return
  }
  func.func @transform_0(%arg0: i32, %arg1: i32) -> (i32, i32) {
    %c0_i32 = arith.constant 0 : i32
    return %arg1, %arg0 : i32, i32
  }
  func.func @transform_1(%arg0: i32, %arg1: i32) -> (i32, i32) {
    %c0_i32 = arith.constant 0 : i32
    return %arg0, %arg1 : i32, i32
  }
  func.func @transform_2(%arg0: i32, %arg1: i32) -> (i32, i32) {
    %c0_i32 = arith.constant 0 : i32
    %c0_i32_0 = arith.constant 0 : i32
    return %c0_i32, %arg0 : i32, i32
  }
  func.func @transform_3(%arg0: i32, %arg1: i32) -> (i32, i32) {
    %c0_i32 = arith.constant 0 : i32
    %c0_i32_0 = arith.constant 0 : i32
    return %c0_i32, %arg0 : i32, i32
  }
  func.func @transform_4(%arg0: i32, %arg1: i32) -> (i32, i32) {
    %c0_i32 = arith.constant 0 : i32
    %c0_i32_0 = arith.constant 0 : i32
    return %c0_i32, %arg0 : i32, i32
  }
}

module attributes {stable_mosaic.version = 11 : i64} {
  func.func @kernel(%arg0: memref<1x128xf32, #tpu.memory_space<vmem>>, %arg1: memref<1x128xf32, #tpu.memory_space<vmem>>, %arg2: memref<1x128xf32, #tpu.memory_space<vmem>>, %arg3: memref<2xf32, #tpu.memory_space<smem>>, %arg4: memref<1x32xf32, #tpu.memory_space<vmem>>, %arg5: memref<1x16xf32, #tpu.memory_space<vmem>>, %arg6: memref<1x32xf32, #tpu.memory_space<vmem>>, %arg7: memref<1x16xf32, #tpu.memory_space<vmem>>, %arg8: memref<1x32xf32, #tpu.memory_space<vmem>>, %arg9: memref<1x16xf32, #tpu.memory_space<vmem>>, %arg10: memref<32x16xf32, #tpu.memory_space<vmem>>, %arg11: memref<32x16xf32, #tpu.memory_space<vmem>>, %arg12: memref<1x16xf32, #tpu.memory_space<vmem>>, %arg13: memref<1x16xf32, #tpu.memory_space<vmem>>, %arg14: memref<1x16xf32, #tpu.memory_space<vmem>>, %arg15: memref<1x32xf32, #tpu.memory_space<vmem>>, %arg16: memref<1x16xf32, #tpu.memory_space<vmem>>, %arg17: memref<1x16xf32, #tpu.memory_space<vmem>>, %arg18: memref<1x16xf32, #tpu.memory_space<vmem>>, %arg19: memref<1x16xf32, #tpu.memory_space<vmem>>, %arg20: memref<1x2xf32, #tpu.memory_space<vmem>>) attributes {dimension_semantics = [], scalar_prefetch = 0 : i64, scratch_operands = 0 : i64, tpu.core_type = #tpu.core_type<tc>} {
    %c0 = arith.constant 0 : index
    %0 = memref.load %arg3[%c0] : memref<2xf32, #tpu.memory_space<smem>>
    %c1 = arith.constant 1 : index
    %1 = memref.load %arg3[%c1] : memref<2xf32, #tpu.memory_space<smem>>
    %cst = arith.constant 1.000000e+00 : f32
    %2 = arith.divf %cst, %1 : f32
    %c0_0 = arith.constant 0 : index
    %c48 = arith.constant 48 : index
    %3 = vector.load %arg2[%c0_0, %c48] : memref<1x128xf32, #tpu.memory_space<vmem>>, vector<1x1xf32>
    %c0_1 = arith.constant 0 : index
    %c0_2 = arith.constant 0 : index
    %4 = vector.load %arg0[%c0_1, %c0_2] : memref<1x128xf32, #tpu.memory_space<vmem>>, vector<1x128xf32>
    %5 = vector.shape_cast %4 : vector<1x128xf32> to vector<1x1x128xf32>
    %cst_3 = arith.constant dense<0.000000e+00> : vector<1xf32>
    %6 = vector.multi_reduction <add>, %5, %cst_3 [1, 2] : vector<1x1x128xf32> to vector<1xf32>
    %7 = vector.shape_cast %6 : vector<1xf32> to vector<1x1x1xf32>
    %8 = vector.extract %7[0, 0, 0] : f32 from vector<1x1x1xf32>
    %9 = vector.broadcast %8 : f32 to vector<1x1xf32>
    %10 = arith.mulf %0, %1 : f32
    %11 = vector.broadcast %10 : f32 to vector<1x1xf32>
    %12 = arith.subf %11, %9 : vector<1x1xf32>
    %c0_4 = arith.constant 0 : index
    %c0_5 = arith.constant 0 : index
    %13 = vector.load %arg20[%c0_4, %c0_5] : memref<1x2xf32, #tpu.memory_space<vmem>>, vector<1x1xf32>
    tpu.vector_store %arg20[%c0_4, %c0_5], %12 {strides = array<i32>} : memref<1x2xf32, #tpu.memory_space<vmem>>, vector<1x1xf32>,
    %c0_6 = arith.constant 0 : index
    %c0_7 = arith.constant 0 : index
    %14 = vector.load %arg1[%c0_6, %c0_7] : memref<1x128xf32, #tpu.memory_space<vmem>>, vector<1x128xf32>
    %15 = vector.shape_cast %14 : vector<1x128xf32> to vector<1x1x128xf32>
    %cst_8 = arith.constant dense<0.000000e+00> : vector<1xf32>
    %16 = vector.multi_reduction <add>, %15, %cst_8 [1, 2] : vector<1x1x128xf32> to vector<1xf32>
    %17 = vector.shape_cast %16 : vector<1xf32> to vector<1x1x1xf32>
    %18 = vector.extract %17[0, 0, 0] : f32 from vector<1x1x1xf32>
    %19 = vector.broadcast %18 : f32 to vector<1x1xf32>
    %20 = vector.broadcast %1 : f32 to vector<1x1xf32>
    %21 = arith.subf %20, %19 : vector<1x1xf32>
    %22 = vector.broadcast %2 : f32 to vector<1x1xf32>
    %23 = arith.mulf %21, %22 : vector<1x1xf32>
    %cst_9 = arith.constant 1.000000e+00 : f32
    %24 = vector.broadcast %cst_9 : f32 to vector<1x1xf32>
    %25 = arith.minimumf %23, %24 : vector<1x1xf32>
    %c0_10 = arith.constant 0 : index
    %c1_11 = arith.constant 1 : index
    %26 = vector.load %arg20[%c0_10, %c1_11] : memref<1x2xf32, #tpu.memory_space<vmem>>, vector<1x1xf32>
    tpu.vector_store %arg20[%c0_10, %c1_11], %25 {strides = array<i32>} : memref<1x2xf32, #tpu.memory_space<vmem>>, vector<1x1xf32>,
    %c0_12 = arith.constant 0 : index
    %c0_13 = arith.constant 0 : index
    %27 = vector.load %arg1[%c0_12, %c0_13] : memref<1x128xf32, #tpu.memory_space<vmem>>, vector<1x32xf32>
    %c0_14 = arith.constant 0 : index
    %c0_15 = arith.constant 0 : index
    %28 = vector.load %arg2[%c0_14, %c0_15] : memref<1x128xf32, #tpu.memory_space<vmem>>, vector<1x32xf32>
    %c0_16 = arith.constant 0 : index
    %c0_17 = arith.constant 0 : index
    %29 = vector.load %arg6[%c0_16, %c0_17] : memref<1x32xf32, #tpu.memory_space<vmem>>, vector<1x32xf32>
    %c0_18 = arith.constant 0 : index
    %c0_19 = arith.constant 0 : index
    %30 = vector.load %arg8[%c0_18, %c0_19] : memref<1x32xf32, #tpu.memory_space<vmem>>, vector<1x32xf32>
    %cst_20 = arith.constant -2.000000e+00 : f32
    %31 = vector.broadcast %cst_20 : f32 to vector<1x32xf32>
    %32 = arith.mulf %31, %27 : vector<1x32xf32>
    %33 = arith.addf %29, %30 : vector<1x32xf32>
    %cst_21 = arith.constant 2.000000e+00 : f32
    %34 = vector.broadcast %cst_21 : f32 to vector<1x32xf32>
    %35 = arith.mulf %34, %33 : vector<1x32xf32>
    %36 = arith.mulf %35, %28 : vector<1x32xf32>
    %37 = arith.addf %32, %36 : vector<1x32xf32>
    %38 = arith.mulf %29, %30 : vector<1x32xf32>
    %cst_22 = arith.constant 2.000000e+00 : f32
    %39 = vector.broadcast %cst_22 : f32 to vector<1x32xf32>
    %40 = arith.mulf %39, %38 : vector<1x32xf32>
    %41 = vector.broadcast %3 : vector<1x1xf32> to vector<1x32xf32>
    %42 = arith.mulf %40, %41 : vector<1x32xf32>
    %43 = arith.subf %37, %42 : vector<1x32xf32>
    %c0_23 = arith.constant 0 : index
    %c0_24 = arith.constant 0 : index
    %44 = vector.load %arg4[%c0_23, %c0_24] : memref<1x32xf32, #tpu.memory_space<vmem>>, vector<1x32xf32>
    %cst_25 = arith.constant 0.000000e+00 : f32
    %45 = vector.broadcast %cst_25 : f32 to vector<1x32xf32>
    %46 = arith.cmpf ogt, %44, %45 : vector<1x32xf32>
    %cst_26 = arith.constant 0.000000e+00 : f32
    %47 = vector.broadcast %cst_26 : f32 to vector<1x32xf32>
    %48 = arith.select %46, %43, %47 : vector<1x32xi1>, vector<1x32xf32>
    %49 = vector.broadcast %2 : f32 to vector<1x32xf32>
    %50 = arith.mulf %48, %49 : vector<1x32xf32>
    %c0_27 = arith.constant 0 : index
    %c0_28 = arith.constant 0 : index
    %51 = vector.load %arg15[%c0_27, %c0_28] : memref<1x32xf32, #tpu.memory_space<vmem>>, vector<1x32xf32>
    tpu.vector_store %arg15[%c0_27, %c0_28], %50 {strides = array<i32>} : memref<1x32xf32, #tpu.memory_space<vmem>>, vector<1x32xf32>,
    %c0_29 = arith.constant 0 : index
    %c32 = arith.constant 32 : index
    %52 = vector.load %arg1[%c0_29, %c32] : memref<1x128xf32, #tpu.memory_space<vmem>>, vector<1x16xf32>
    %c0_30 = arith.constant 0 : index
    %c32_31 = arith.constant 32 : index
    %53 = vector.load %arg2[%c0_30, %c32_31] : memref<1x128xf32, #tpu.memory_space<vmem>>, vector<1x16xf32>
    %c0_32 = arith.constant 0 : index
    %c0_33 = arith.constant 0 : index
    %54 = vector.load %arg7[%c0_32, %c0_33] : memref<1x16xf32, #tpu.memory_space<vmem>>, vector<1x16xf32>
    %c0_34 = arith.constant 0 : index
    %c0_35 = arith.constant 0 : index
    %55 = vector.load %arg9[%c0_34, %c0_35] : memref<1x16xf32, #tpu.memory_space<vmem>>, vector<1x16xf32>
    %cst_36 = arith.constant -2.000000e+00 : f32
    %56 = vector.broadcast %cst_36 : f32 to vector<1x16xf32>
    %57 = arith.mulf %56, %52 : vector<1x16xf32>
    %58 = arith.addf %54, %55 : vector<1x16xf32>
    %cst_37 = arith.constant 2.000000e+00 : f32
    %59 = vector.broadcast %cst_37 : f32 to vector<1x16xf32>
    %60 = arith.mulf %59, %58 : vector<1x16xf32>
    %61 = arith.mulf %60, %53 : vector<1x16xf32>
    %62 = arith.addf %57, %61 : vector<1x16xf32>
    %63 = arith.mulf %54, %55 : vector<1x16xf32>
    %cst_38 = arith.constant 2.000000e+00 : f32
    %64 = vector.broadcast %cst_38 : f32 to vector<1x16xf32>
    %65 = arith.mulf %64, %63 : vector<1x16xf32>
    %66 = vector.broadcast %3 : vector<1x1xf32> to vector<1x16xf32>
    %67 = arith.mulf %65, %66 : vector<1x16xf32>
    %68 = arith.subf %62, %67 : vector<1x16xf32>
    %c0_39 = arith.constant 0 : index
    %c0_40 = arith.constant 0 : index
    %69 = vector.load %arg5[%c0_39, %c0_40] : memref<1x16xf32, #tpu.memory_space<vmem>>, vector<1x16xf32>
    %cst_41 = arith.constant 0.000000e+00 : f32
    %70 = vector.broadcast %cst_41 : f32 to vector<1x16xf32>
    %71 = arith.cmpf ogt, %69, %70 : vector<1x16xf32>
    %cst_42 = arith.constant 0.000000e+00 : f32
    %72 = vector.broadcast %cst_42 : f32 to vector<1x16xf32>
    %73 = arith.select %71, %68, %72 : vector<1x16xi1>, vector<1x16xf32>
    %74 = vector.broadcast %2 : f32 to vector<1x16xf32>
    %75 = arith.mulf %73, %74 : vector<1x16xf32>
    %c0_43 = arith.constant 0 : index
    %c0_44 = arith.constant 0 : index
    %76 = vector.load %arg16[%c0_43, %c0_44] : memref<1x16xf32, #tpu.memory_space<vmem>>, vector<1x16xf32>
    tpu.vector_store %arg16[%c0_43, %c0_44], %75 {strides = array<i32>} : memref<1x16xf32, #tpu.memory_space<vmem>>, vector<1x16xf32>,
    %c0_45 = arith.constant 0 : index
    %c0_46 = arith.constant 0 : index
    %77 = vector.load %arg10[%c0_45, %c0_46] : memref<32x16xf32, #tpu.memory_space<vmem>>, vector<32x16xf32>
    %c0_47 = arith.constant 0 : index
    %c0_48 = arith.constant 0 : index
    %78 = vector.load %arg11[%c0_47, %c0_48] : memref<32x16xf32, #tpu.memory_space<vmem>>, vector<32x16xf32>
    %c0_49 = arith.constant 0 : index
    %c0_50 = arith.constant 0 : index
    %79 = vector.load %arg12[%c0_49, %c0_50] : memref<1x16xf32, #tpu.memory_space<vmem>>, vector<1x16xf32>
    %c0_51 = arith.constant 0 : index
    %c0_52 = arith.constant 0 : index
    %80 = vector.load %arg2[%c0_51, %c0_52] : memref<1x128xf32, #tpu.memory_space<vmem>>, vector<1x32xf32>
    %c0_53 = arith.constant 0 : index
    %c32_54 = arith.constant 32 : index
    %81 = vector.load %arg2[%c0_53, %c32_54] : memref<1x128xf32, #tpu.memory_space<vmem>>, vector<1x16xf32>
    %c0_55 = arith.constant 0 : index
    %c32_56 = arith.constant 32 : index
    %82 = vector.load %arg1[%c0_55, %c32_56] : memref<1x128xf32, #tpu.memory_space<vmem>>, vector<1x16xf32>
    %83 = arith.mulf %77, %78 : vector<32x16xf32>
    %cst_57 = arith.constant dense<0.000000e+00> : vector<16xf32>
    %84 = vector.multi_reduction <add>, %83, %cst_57 [0] : vector<32x16xf32> to vector<16xf32>
    %85 = vector.shape_cast %84 : vector<16xf32> to vector<1x16xf32>
    %cst_58 = arith.constant -2.000000e+00 : f32
    %86 = vector.broadcast %cst_58 : f32 to vector<1x16xf32>
    %87 = arith.mulf %86, %85 : vector<1x16xf32>
    %cst_59 = arith.constant 2.000000e+00 : f32
    %88 = vector.broadcast %cst_59 : f32 to vector<1x16xf32>
    %89 = arith.mulf %88, %79 : vector<1x16xf32>
    %90 = arith.mulf %89, %81 : vector<1x16xf32>
    %91 = arith.addf %87, %90 : vector<1x16xf32>
    %cst_60 = arith.constant 2.000000e+00 : f32
    %92 = vector.broadcast %cst_60 : f32 to vector<1x16xf32>
    %93 = arith.mulf %92, %82 : vector<1x16xf32>
    %94 = arith.subf %91, %93 : vector<1x16xf32>
    %95 = vector.broadcast %2 : f32 to vector<1x16xf32>
    %96 = arith.mulf %94, %95 : vector<1x16xf32>
    %c0_61 = arith.constant 0 : index
    %c0_62 = arith.constant 0 : index
    %97 = vector.load %arg17[%c0_61, %c0_62] : memref<1x16xf32, #tpu.memory_space<vmem>>, vector<1x16xf32>
    tpu.vector_store %arg17[%c0_61, %c0_62], %96 {strides = array<i32>} : memref<1x16xf32, #tpu.memory_space<vmem>>, vector<1x16xf32>,
    %cst_63 = arith.constant dense<0.000000e+00> : vector<1x16xf32>
    %98 = tpu.matmul %80, %77, %cst_63 {dimension_numbers = #tpu.dot_dimension_numbers<[1], [0], [0], [1], [0, 0, 1, 1], [], []>} : vector<1x32xf32>, vector<32x16xf32>, vector<1x16xf32> -> vector<1x16xf32>
    %cst_64 = arith.constant -2.000000e+00 : f32
    %99 = vector.broadcast %cst_64 : f32 to vector<1x16xf32>
    %100 = arith.mulf %99, %98 : vector<1x16xf32>
    %cst_65 = arith.constant 2.000000e+00 : f32
    %101 = vector.broadcast %cst_65 : f32 to vector<1x16xf32>
    %102 = arith.mulf %101, %81 : vector<1x16xf32>
    %103 = arith.addf %100, %102 : vector<1x16xf32>
    %cst_66 = arith.constant 2.000000e+00 : f32
    %104 = vector.broadcast %cst_66 : f32 to vector<1x16xf32>
    %105 = arith.mulf %104, %79 : vector<1x16xf32>
    %106 = vector.broadcast %3 : vector<1x1xf32> to vector<1x16xf32>
    %107 = arith.mulf %105, %106 : vector<1x16xf32>
    %108 = arith.subf %103, %107 : vector<1x16xf32>
    %c0_67 = arith.constant 0 : index
    %c0_68 = arith.constant 0 : index
    %109 = vector.load %arg13[%c0_67, %c0_68] : memref<1x16xf32, #tpu.memory_space<vmem>>, vector<1x16xf32>
    %cst_69 = arith.constant 0.000000e+00 : f32
    %110 = vector.broadcast %cst_69 : f32 to vector<1x16xf32>
    %111 = arith.cmpf ogt, %109, %110 : vector<1x16xf32>
    %cst_70 = arith.constant 0.000000e+00 : f32
    %112 = vector.broadcast %cst_70 : f32 to vector<1x16xf32>
    %113 = arith.select %111, %108, %112 : vector<1x16xi1>, vector<1x16xf32>
    %114 = vector.broadcast %2 : f32 to vector<1x16xf32>
    %115 = arith.mulf %113, %114 : vector<1x16xf32>
    %c0_71 = arith.constant 0 : index
    %c0_72 = arith.constant 0 : index
    %116 = vector.load %arg18[%c0_71, %c0_72] : memref<1x16xf32, #tpu.memory_space<vmem>>, vector<1x16xf32>
    tpu.vector_store %arg18[%c0_71, %c0_72], %115 {strides = array<i32>} : memref<1x16xf32, #tpu.memory_space<vmem>>, vector<1x16xf32>,
    %c0_73 = arith.constant 0 : index
    %c0_74 = arith.constant 0 : index
    %117 = vector.load %arg14[%c0_73, %c0_74] : memref<1x16xf32, #tpu.memory_space<vmem>>, vector<1x16xf32>
    %cst_75 = arith.constant 0.000000e+00 : f32
    %118 = vector.broadcast %cst_75 : f32 to vector<1x16xf32>
    %119 = arith.cmpf ogt, %117, %118 : vector<1x16xf32>
    %cst_76 = arith.constant 2.000000e+00 : f32
    %120 = vector.broadcast %cst_76 : f32 to vector<1x16xf32>
    %121 = arith.mulf %120, %81 : vector<1x16xf32>
    %cst_77 = arith.constant 0.000000e+00 : f32
    %122 = vector.broadcast %cst_77 : f32 to vector<1x16xf32>
    %123 = arith.select %119, %121, %122 : vector<1x16xi1>, vector<1x16xf32>
    %124 = vector.broadcast %2 : f32 to vector<1x16xf32>
    %125 = arith.mulf %123, %124 : vector<1x16xf32>
    %c0_78 = arith.constant 0 : index
    %c0_79 = arith.constant 0 : index
    %126 = vector.load %arg19[%c0_78, %c0_79] : memref<1x16xf32, #tpu.memory_space<vmem>>, vector<1x16xf32>
    tpu.vector_store %arg19[%c0_78, %c0_79], %125 {strides = array<i32>} : memref<1x16xf32, #tpu.memory_space<vmem>>, vector<1x16xf32>,
    return
  }
}

</mosaic_0001>

<bundles_post_ra>
// kernel: _forward_impl.3
= control target key start
LH: loop header
LB: loop body
LE: loop exit
PB: predicated region body
PF: predicated region fallthrough
CT: control target
= control target key end

     0   :  { %s893_s0 = inlined_call_operand.vmem [shape: f32[1,128], index: 0, kind: input, shape index: {}]   ;;  %s894_s1 = inlined_call_operand.vmem [shape: f32[1,128], index: 1, kind: input, shape index: {}]   ;;  %s895_s2 = inlined_call_operand.vmem [shape: f32[1,128], index: 2, kind: input, shape index: {}]   ;;  %s896_s3 = inlined_call_operand.vmem [shape: f32[2], index: 3, kind: input, shape index: {}]   ;;  %s897_s4 = inlined_call_operand.vmem [shape: f32[1,32], index: 4, kind: input, shape index: {}]   ;;  %s898_s5 = inlined_call_operand.vmem [shape: f32[1,16], index: 5, kind: input, shape index: {}]   ;;  %s899_s6 = inlined_call_operand.vmem [shape: f32[1,32], index: 6, kind: input, shape index: {}]   ;;  %s900_s7 = inlined_call_operand.vmem [shape: f32[1,16], index: 7, kind: input, shape index: {}]   ;;  %s901_s8 = inlined_call_operand.vmem [shape: f32[1,32], index: 8, kind: input, shape index: {}]   ;;  %s902_s9 = inlined_call_operand.vmem [shape: f32[1,16], index: 9, kind: input, shape index: {}]   ;;  %s903_s10 = inlined_call_operand.vmem [shape: f32[32,16], index: 10, kind: input, shape index: {}]   ;;  %s904_s11 = inlined_call_operand.vmem [shape: f32[32,16], index: 11, kind: input, shape index: {}]   ;;  %s905_s12 = inlined_call_operand.vmem [shape: f32[1,16], index: 12, kind: input, shape index: {}]   ;;  %s906_s13 = inlined_call_operand.vmem [shape: f32[1,16], index: 13, kind: input, shape index: {}]   ;;  %s907_s14 = inlined_call_operand.vmem [shape: f32[1,16], index: 14, kind: input, shape index: {}]   ;;  %s908_s15 = inlined_call_operand.hbm [shape: f32[1,32], index: 15, kind: output, shape index: {0}]   ;;  %s909_s16 = inlined_call_operand.hbm [shape: f32[1,16], index: 16, kind: output, shape index: {1}]   ;;  %s910_s17 = inlined_call_operand.hbm [shape: f32[1,16], index: 17, kind: output, shape index: {2}]   ;;  %s911_s18 = inlined_call_operand.hbm [shape: f32[1,16], index: 18, kind: output, shape index: {3}]   ;;  %s912_s19 = inlined_call_operand.hbm [shape: f32[1,16], index: 19, kind: output, shape index: {4}]   ;;  %s913_s20 = inlined_call_operand.vmem [shape: f32[1,2], index: 20, kind: output, shape index: {5}]  }
   0x1   :  { %916 = sst [smem:[#allocation16_spill]] %s893_s0 }
   0x2   :  { %917 = sst [smem:[#allocation17_spill]] %s894_s1 }
   0x3   :  { %918 = sst [smem:[#allocation18_spill]] %s895_s2 }
   0x4   :  { %919 = sst [smem:[#allocation19_spill]] %s896_s3 }
   0x5   :  { %920 = sst [smem:[#allocation20_spill]] %s897_s4 }
   0x6   :  { %26 = vsyncpa [#allocation4], 0 }
   0x7   :  { %27 = vsyncpa [#allocation3], 0 }
   0x8   :  { %28 = vsyncpa [#allocation7], 0 }
   0x9   :  { %29 = vsyncpa [#allocation10], 0  ;;  %s921_s23 = sld [smem:[#allocation19_spill]] }
   0xf   :  { %s42_s24 = sshll.u32 %s921_s23, 4  ;;  %s43_s24 = int_to_ptr.vmem [resolvable:$true] %s42_s24 }
  0x10   :  { %s444_s2 = scalar_lea.vmem %s43_s24, 16  ;;  %p449_p1 = scmp.lt.s32.totalorder %s43_s24, %s43_s24 }
  0x11   :  { %p445_p0 = scmp.ne.s32.totalorder %s43_s24, %s444_s2  ;;  %p450_p2 = scmp.lt.s32.totalorder %s444_s2, %s444_s2 }
  0x13   :  { %p451_p3 = por %p450_p2, %p449_p1 }
  0x15   :  { %p452_p4 = pnand %p451_p3, %p445_p0 }
  0x17   :  { %455 = shalt.err (!%p452_p4)
}
  0x18   :  { %s574_s25 = smov [#allocation2]  }
  0x19   :  { %45 = dma.vmem_to_smem %s43_s24, 16, %s574_s25, [#allocation4]  }
  0x1a   :  { %566 = dma.done.wait [#allocation4], 16  }
  0x1b   :  { %567 = vsyncadd [#allocation4], 4294967280 }
  0x1c   :  { %71 = sfence }
  0x1d   :  { %s922_s27 = sld [smem:[#allocation18_spill]]  ;;  %v575_v1 = vmov 48   ;;  %v178_v3 = vld [vmem:[%s903_s10] sm:$0xff]  ;;  %v179_v4 = vld [vmem:[%s903_s10 + $0x8] sm:$0xff]  ;;  %vm193_vm0 = vcmask 130048   ;;  %v576_v6 = vmov 0.0|0.0   ;;  %v131_v36 = vlaneseq }
  0x1e   :  { %441 = vset.pattern.permute.xlu0 %v575_v1  ;;  %v182_v5 = vld [vmem:[%s904_s11] sm:$0xff]  ;;  %417 = vmatprep.subr.bf16.mxu0 %v576_v6  ;;  %v183_v7 = vld [vmem:[%s904_s11 + $0x8] sm:$0xff]  ;;  %v418_v9 = vpack.c.bf16 %v179_v4, %v178_v3  ;;  %v180_v10 = vld [vmem:[%s903_s10 + $0x10] sm:$0xff]  ;;  %vm577_vm1 = vmmov 0   ;;  %v578_v15 = vmov 0.0   ;;  %s724_s0 = sld [smem:[#allocation2 + $0x1]] }
  0x1f   :  { %v189_v8 = vmul.f32 %v182_v5, %v178_v3  ;;  %v181_v11 = vld [vmem:[%s903_s10 + $0x18] sm:$0xff]  ;;  %v190_v12 = vmul.f32 %v183_v7, %v179_v4  ;;  %v184_v13 = vld [vmem:[%s904_s11 + $0x10] sm:$0xff]  ;;  %414 = vmatprep.mubr.msk.f32.mxu0 %vm577_vm1, %v578_v15  ;;  %s923_s1 = sld [smem:[#allocation16_spill]]  ;;  %vm79_vm2 = vcmask 1040384   ;;  %s924_s23 = sld [smem:[#allocation17_spill]]  ;;  %vm227_vm3 = vcmask 261120  }
  0x20   :  { %v185_v14 = vld [vmem:[%s904_s11 + $0x18] sm:$0xff]  ;;  %419 = vmatpush3.bf16.msra.mxu0 %v418_v9  ;;  %v191_v17 = vmul.f32 %v184_v13, %v180_v10  ;;  %v421_v19 = vpack.c.bf16 %v181_v11, %v180_v10  ;;  %s579_s24 = smov 96   ;;  %v117_v33 = vld [vmem:[%s899_s6] sm:$0x1]  ;;  %v132_v40 = vshrl.u32 %v131_v36, 7  ;;  %s580_s2 = smov 32  }
  0x21   :  { %v194_v16 = vsel %vm193_vm0, %v189_v8, 0.0  ;;  %v192_v18 = vmul.f32 %v185_v14, %v181_v11  ;;  %v195_v21 = vsel %vm193_vm0, %v190_v12, 0.0  ;;  %420 = vmatprep.subr.bf16.mxu0 %v576_v6  ;;  %v118_v34 = vld [vmem:[%s901_s8] sm:$0x1]  ;;  %vm141_vm5 = vcmask 253952   ;;  %s72_s25 = sld [smem:[#allocation2]] }
  0x22   :  { %v196_v23 = vadd.f32 %v195_v21, %v194_v16  ;;  %v197_v24 = vsel %vm193_vm0, %v191_v17, 0.0  ;;  %v120_v35 = vadd.f32 %v118_v34, %v117_v33  ;;  %v145_v37 = vld [vmem:[%s900_s7] sm:$0x1]  ;;  %v124_v43 = vmul.f32 %v118_v34, %v117_v33  ;;  %s581_s8 = smov [#allocation5]  }
  0x23   :  { %v77_v0 = vld [vmem:[%s922_s27] sm:$0x1]  ;;  %v199_v26 = vsel %vm193_vm0, %v192_v18, 0.0  ;;  %v763_v45 = vsub.s32 0, %v132_v40  ;;  %vm94_vm6 = vcmask 0   ;;  %vm113_vm7 = vcmask 8200  }
  0x24   :  { %v144_v2 = vld [vmem:[%s922_s27] sm:$0x1]  ;;  %128 = vperm.xlu0 %441, %v77_v0   ;;  %v198_v27 = vadd.f32 %v197_v24, %v196_v23  ;;  %422 = vmatpush3.bf16.msra.mxu0 %v421_v19  ;;  %v74_v30 = vstv %s724_s0  ;;  %v121_v39 = vmul.f32 2.0, %v120_v35  ;;  %v125_v49 = vmul.f32 2.0, %v124_v43 }
  0x25   :  { %v78_v20 = vld [vmem:[%s923_s1] sm:$0x1]  ;;  %442 = vrcp.f32 %v74_v30 }
  0x26   :  { %v96_v22 = vld [vmem:[%s924_s23] sm:$0x1]  ;;  %v80_v25 = vsel %vm79_vm2, %v78_v20, 0.0  ;;  %v741_v31 = vadd.f32 %v199_v26, %v198_v27 }
  0x27   :  { %81 = vadd.xlane.f32.xlu1 %v80_v25  ;;  %v187_v28 = vld [vmem:[%s922_s27] sm:$0x1]  ;;  %v97_v29 = vsel %vm79_vm2, %v96_v22, 0.0  ;;  %s91_s3 = smul.f32 %s724_s0, %s72_s25 }
  0x28   :  { %151 = vrot.lane.b32.xlu0 %v144_v2, %s579_s24  ;;  %415 = vmatmul.mubr.msk.f32.vlgmr.msra.gmra.mrb[0].mxu0 %vm227_vm3, %v187_v28  ;;  %v146_v38 = vld [vmem:[%s902_s9] sm:$0x1]  ;;  %s925_s9 = sld [smem:[#allocation20_spill]]  ;;  %v301_v62 = vmul.f32 2.0, %v187_v28  ;;  %v201_v25 = vrot.slane %v741_v31, 4 }
  0x29   :  { %v115_v41 = vld [vmem:[%s924_s23] sm:$0x1]  ;;  %v160_v44 = vmul.f32 %v146_v38, %v145_v37  ;;  %v148_v46 = vadd.f32 %v146_v38, %v145_v37  ;;  %v92_v16 = vstv %s91_s3 }
  0x2a   :  { %v116_v42 = vld [vmem:[%s922_s27] sm:$0x1]  ;;  %v119_v47 = vmul.f32 -2.0, %v115_v41  ;;  %v306_v1 = vrot.slane %v301_v62, %v763_v45  ;;  %v202_v26 = vadd.f32 %v201_v25, %v741_v31 }
  0x2b   :  { %98 = vadd.xlane.f32.xlu1 %v97_v29  ;;  %v122_v48 = vmul.f32 %v121_v39, %v116_v42  ;;  %v161_v50 = vmul.f32 2.0, %v160_v44  ;;  %v149_v53 = vmul.f32 2.0, %v148_v46  ;;  %v143_v29 = vld [vmem:[%s924_s23] sm:$0x1] }
  0x2c   :  { %v203_v27 = vrot.slane %v202_v26, 2  ;;  %v318_v33 = vld [vmem:[%s907_s14] sm:$0x1] }
  0x2d   :  { %v123_v54 = vadd.f32 %v122_v48, %v119_v47  ;;  %v188_v35 = vld [vmem:[%s924_s23] sm:$0x1]  ;;  %vm319_vm8 = vcmp.gt.f32.partialorder %v318_v33, 0.0 }
  0x2e   :  { %v137_v55 = vld [vmem:[%s925_s9] sm:$0x1]  ;;  %v215_v39 = vmul.f32 2.0, %v188_v35  ;;  %s332_s9 = sshll.u32 %s581_s8, 4  ;;  %s333_s9 = int_to_ptr.vmem [resolvable:$true] %s332_s9 }
  0x2f   :  { %v443_v32 = vpop.eup %442  ;;  %vm138_vm4 = vcmp.gt.f32.partialorder %v137_v55, 0.0  ;;  %v186_v31 = vld [vmem:[%s905_s12] sm:$0x1]  ;;  %s456_s14 = scalar_lea.vmem %s333_s9, 16  ;;  %s460_s23 = scalar_lea.vmem %s333_s9, 32 }
  0x30   :  { %423 = vpush %v443_v32  ;;  %v147_v32 = vmul.f32 -2.0, %v143_v29  ;;  %v208_v42 = vmul.f32 2.0, %v186_v31  ;;  %p457_p5 = scmp.ne.s32.totalorder %s333_s9, %s456_s14  ;;  %p461_p6 = scmp.lt.s32.totalorder %s333_s9, %s333_s9 }
  0x31   :  { %p462_p7 = scmp.lt.s32.totalorder %s460_s23, %s456_s14 }
  0x33   :  { %p463_p8 = por %p462_p7, %p461_p6 }
  0x35   :  { %p464_p9 = pnand %p463_p8, %p457_p5 }
  0x61   :  { %s424_s27 = spop %423 }
  0x62   :  { %v773_v60 = vstv %s424_s27 }
  0xa3   :  { %v129_v51 = vpop.permute.xlu0 %128 }
  0xa4   :  { %v766_v52 = vrot.slane %v129_v51, %v763_v45 }
  0xa6   :  { %v135_v56 = vmul.f32 %v766_v52, %v125_v49  ;;  %v162_v57 = vmul.f32 %v161_v50, %v766_v52 }
  0xa7   :  { %v152_v58 = vpop.permute.xlu0 %151 }
  0xa8   :  { %v154_v59 = vmul.f32 %v152_v58, %v149_v53  ;;  %164 = vrot.lane.b32.xlu1 %v162_v57, %s580_s2  ;;  %v136_v61 = vsub.f32 %v123_v54, %v135_v56 }
  0xaa   :  { %156 = vrot.lane.b32.xlu0 %v154_v59, %s580_s2  ;;  %v139_v63 = vsel %vm138_vm4, %v136_v61, 0.0 }
  0xab   :  { %v140_v0 = vmul.f32 %v139_v63, %v773_v60 }
  0xac   :  { %320 = vrot.lane.b32.xlu1 %v301_v62, %s579_s24 }
  0xad   :  { %142 = vst.msk [vmem:[#allocation5] sm:$0x1] %vm141_vm5, %v140_v0 }
  0xae   :  { %210 = vrot.lane.b32.xlu0 %v187_v28, %s579_s24  ;;  %v204_v28 = vadd.f32 %v203_v27, %v202_v26 }
  0xb2   :  { %307 = vrot.lane.b32.xlu0 %v306_v1, %s579_s24 }
  0xb4   :  { %v82_v2 = vpop.xlane.xlu1 %81 }
  0xb5   :  { %v83_v3 = vrot.slane %v82_v2, 4 }
  0xb7   :  { %v84_v4 = vadd.f32 %v83_v3, %v82_v2 }
  0xb8   :  { %v99_v5 = vpop.xlane.xlu1 %98 }
  0xb9   :  { %v85_v6 = vrot.slane %v84_v4, 2  ;;  %v100_v7 = vrot.slane %v99_v5, 4 }
  0xbb   :  { %v101_v8 = vadd.f32 %v100_v7, %v99_v5  ;;  %v86_v9 = vadd.f32 %v85_v6, %v84_v4 }
  0xbd   :  { %v102_v10 = vrot.slane %v101_v8, 2  ;;  %v87_v11 = vrot.slane %v86_v9, 1 }
  0xbf   :  { %v88_v12 = vadd.f32 %v87_v11, %v86_v9  ;;  %v103_v13 = vadd.f32 %v102_v10, %v101_v8 }
  0xc1   :  { %425 = vpush %v88_v12  ;;  %v104_v14 = vrot.slane %v103_v13, 1 }
  0xc3   :  { %v105_v15 = vadd.f32 %v104_v14, %v103_v13 }
  0xc5   :  { %427 = vpush %v105_v15 }
  0xf2   :  { %s426_s26 = spop %425 }
  0xf3   :  { %v90_v17 = vstv %s426_s26 }
  0xf4   :  { %v93_v18 = vsub.f32 %v92_v16, %v90_v17 }
  0xf6   :  { %95 = vst.msk [vmem:[%s913_s20] sm:$0x1] %vm94_vm6, %v93_v18  ;;  %s428_s29 = spop %427 }
  0xf7   :  { %v107_v19 = vstv %s428_s29 }
  0xf8   :  { %v109_v20 = vsub.f32 %v74_v30, %v107_v19  ;;  %v205_v30 = vrot.slane %v204_v28, 1 }
  0xfa   :  { %v111_v21 = vmul.f32 %v773_v60, %v109_v20  ;;  %v206_v36 = vadd.f32 %v205_v30, %v204_v28 }
  0xfb   :  { %v296_v23 = vpop.f32.mrb[0].mxu0 }
  0xfc   :  { %v112_v22 = vmin.f32 %v111_v21, 1.0  ;;  %v416_v24 = vpop.f32.mrb[1].mxu0  ;;  %v207_v44 = vmul.f32 -2.0, %v206_v36 }
  0xfe   :  { %114 = vst.msk [vmem:[%s913_s20] sm:$0x1] %vm113_vm7, %v112_v22 }
 0x11a   :  { %v165_v34 = vpop.permute.xlu1 %164 }
 0x11c   :  { %v157_v37 = vpop.permute.xlu0 %156 }
 0x11d   :  { %v159_v38 = vadd.f32 %v157_v37, %v147_v32 }
 0x11e   :  { %v321_v40 = vpop.permute.xlu1 %320 }
 0x11f   :  { %v167_v41 = vsub.f32 %v159_v38, %v165_v34  ;;  %v323_v43 = vsel %vm319_vm8, %v321_v40, 0.0 }
 0x120   :  { %467 = shalt.err (!%p464_p9)
}
 0x121   :  { %s468_s2 = scalar_lea.hbm %s908_s15, 16 }
 0x122   :  { %p469_p10 = scmp.ne.s32.totalorder %s908_s15, %s468_s2  ;;  %p472_p11 = scmp.lt.u32.totalorder %s468_s2, %s908_s15 }
 0x124   :  { %p474_p12 = pnand %p472_p11, %p469_p10 }
 0x126   :  { %477 = shalt.err (!%p474_p12)
}
 0x127   :  { %335 = dma.vmem_to_hbm [thread:$0]  %s333_s9, 16, %s908_s15, [#allocation3]   ;;  %v211_v46 = vpop.permute.xlu0 %210  ;;  %v324_v47 = vmul.f32 %v323_v43, %v773_v60  ;;  %171 = vrot.lane.b32.xlu0 %v167_v41, %s579_s24  ;;  %v300_v49 = vmul.f32 -2.0, %v296_v23  ;;  %v220_v50 = vrot.slane %v215_v39, %v763_v45  ;;  %vm176_vm9 = vcmask 122880   ;;  %v313_v53 = vld [vmem:[%s906_s13] sm:$0x1] }
 0x128   :  { %v213_v48 = vmul.f32 %v211_v46, %v208_v42  ;;  %v311_v55 = vmul.f32 %v208_v42, %v766_v52  ;;  %vm314_vm10 = vcmp.gt.f32.partialorder %v313_v53, 0.0  ;;  %s582_s15 = smov [#allocation9]   ;;  %s583_s1 = smov [#allocation11]  }
 0x129   :  { %325 = vst.msk [vmem:[#allocation11] sm:$0x1] %vm176_vm9, %v324_v47  ;;  %s362_s21 = sshll.u32 %s582_s15, 4  ;;  %s372_s0 = sshll.u32 %s583_s1, 4  ;;  %s363_s21 = int_to_ptr.vmem [resolvable:$true] %s362_s21  ;;  %s828_s0 = int_to_ptr.vmem [resolvable:$true] %s372_s0 }
 0x12a   :  { %v820_v51 = vadd.f32 %v213_v48, %v207_v44  ;;  %s478_s13 = scalar_lea.vmem %s363_s21, 16  ;;  %s482_s11 = scalar_lea.vmem %s363_s21, 32 }
 0x12b   :  { %v308_v54 = vpop.permute.xlu0 %307  ;;  %221 = vrot.lane.b32.xlu0 %v220_v50, %s579_s24  ;;  %p479_p13 = scmp.ne.s32.totalorder %s363_s21, %s478_s13  ;;  %p483_p0 = scmp.lt.s32.totalorder %s363_s21, %s363_s21 }
 0x12c   :  { %v310_v56 = vadd.f32 %v308_v54, %v300_v49  ;;  %p484_p1 = scmp.lt.s32.totalorder %s482_s11, %s478_s13 }
 0x12e   :  { %v312_v57 = vsub.f32 %v310_v56, %v311_v55  ;;  %p485_p2 = por %p484_p1, %p483_p0 }
 0x130   :  { %v315_v45 = vsel %vm314_vm10, %v312_v57, 0.0  ;;  %p486_p3 = pnand %p485_p2, %p479_p13 }
 0x131   :  { %v316_v58 = vmul.f32 %v315_v45, %v773_v60 }
 0x133   :  { %317 = vst.msk [vmem:[#allocation9] sm:$0x1] %vm176_vm9, %v316_v58 }
 0x134   :  { %489 = shalt.err (!%p486_p3)
}
 0x135   :  { %s490_s20 = scalar_lea.hbm %s911_s18, 16 }
 0x136   :  { %p491_p4 = scmp.ne.s32.totalorder %s911_s18, %s490_s20  ;;  %p494_p5 = scmp.lt.u32.totalorder %s490_s20, %s911_s18 }
 0x138   :  { %p496_p6 = pnand %p494_p5, %p491_p4 }
 0x13a   :  { %499 = shalt.err (!%p496_p6)
}
 0x13b   :  { %365 = dma.vmem_to_hbm [thread:$0]  %s363_s21, 16, %s911_s18, [#allocation10]  }
 0x13c   :  { %s500_s12 = scalar_lea.vmem %s828_s0, 16  ;;  %s504_s27 = scalar_lea.vmem %s828_s0, 32 }
 0x13d   :  { %p501_p7 = scmp.ne.s32.totalorder %s828_s0, %s500_s12  ;;  %p505_p8 = scmp.lt.s32.totalorder %s828_s0, %s828_s0 }
 0x13e   :  { %p506_p9 = scmp.lt.s32.totalorder %s504_s27, %s500_s12 }
 0x140   :  { %p507_p10 = por %p506_p9, %p505_p8 }
 0x142   :  { %p508_p11 = pnand %p507_p10, %p501_p7 }
 0x144   :  { %511 = shalt.err (!%p508_p11)
}
 0x145   :  { %s512_s3 = scalar_lea.hbm %s912_s19, 16 }
 0x146   :  { %p513_p12 = scmp.ne.s32.totalorder %s912_s19, %s512_s3  ;;  %p516_p13 = scmp.lt.u32.totalorder %s512_s3, %s912_s19 }
 0x148   :  { %p518_p0 = pnand %p516_p13, %p513_p12 }
 0x14a   :  { %521 = shalt.err (!%p518_p0)
}
 0x14b   :  { %375 = dma.vmem_to_hbm [thread:$0]  %s828_s0, 16, %s912_s19, [#allocation10]   ;;  %v168_v52 = vld [vmem:[%s898_s5] sm:$0x1] }
 0x14c   :  { %vm169_vm11 = vcmp.gt.f32.partialorder %v168_v52, 0.0  ;;  %s584_s21 = smov [#allocation6]   ;;  %s585_s13 = smov [#allocation8]  }
 0x14d   :  { %s342_s1 = sshll.u32 %s584_s21, 4  ;;  %s352_s11 = sshll.u32 %s585_s13, 4  ;;  %s343_s1 = int_to_ptr.vmem [resolvable:$true] %s342_s1  ;;  %s353_s11 = int_to_ptr.vmem [resolvable:$true] %s352_s11 }
 0x14e   :  { %s522_s19 = scalar_lea.vmem %s343_s1, 16  ;;  %s526_s0 = scalar_lea.vmem %s343_s1, 32 }
 0x14f   :  { %p523_p1 = scmp.ne.s32.totalorder %s343_s1, %s522_s19  ;;  %p527_p2 = scmp.lt.s32.totalorder %s343_s1, %s343_s1 }
 0x150   :  { %p528_p3 = scmp.lt.s32.totalorder %s526_s0, %s522_s19 }
 0x152   :  { %p529_p4 = por %p528_p3, %p527_p2 }
 0x154   :  { %p530_p5 = pnand %p529_p4, %p523_p1 }
 0x199   :  { %v172_v59 = vpop.permute.xlu0 %171 }
 0x19a   :  { %v174_v61 = vsel %vm169_vm11, %v172_v59, 0.0 }
 0x19b   :  { %v175_v62 = vmul.f32 %v174_v61, %v773_v60 }
 0x19d   :  { %v222_v63 = vpop.permute.xlu0 %221  ;;  %177 = vst.msk [vmem:[#allocation6] sm:$0x1] %vm176_vm9, %v175_v62 }
 0x19e   :  { %v224_v0 = vsub.f32 %v820_v51, %v222_v63 }
 0x19f   :  { %533 = shalt.err (!%p530_p5)
}
 0x1a0   :  { %s534_s6 = scalar_lea.hbm %s909_s16, 16 }
 0x1a1   :  { %p535_p6 = scmp.ne.s32.totalorder %s909_s16, %s534_s6  ;;  %p538_p7 = scmp.lt.u32.totalorder %s534_s6, %s909_s16 }
 0x1a3   :  { %p540_p8 = pnand %p538_p7, %p535_p6 }
 0x1a5   :  { %543 = shalt.err (!%p540_p8)
}
 0x1a6   :  { %345 = dma.vmem_to_hbm [thread:$0]  %s343_s1, 16, %s909_s16, [#allocation7]   ;;  %v225_v1 = vmul.f32 %v224_v0, %v773_v60 }
 0x1a7   :  { %s544_s23 = scalar_lea.vmem %s353_s11, 16  ;;  %s548_s12 = scalar_lea.vmem %s353_s11, 32 }
 0x1a8   :  { %226 = vst.msk [vmem:[#allocation8] sm:$0x1] %vm176_vm9, %v225_v1  ;;  %p545_p9 = scmp.ne.s32.totalorder %s353_s11, %s544_s23  ;;  %p549_p10 = scmp.lt.s32.totalorder %s353_s11, %s353_s11 }
 0x1a9   :  { %p550_p11 = scmp.lt.s32.totalorder %s548_s12, %s544_s23 }
 0x1ab   :  { %p551_p12 = por %p550_p11, %p549_p10 }
 0x1ad   :  { %p552_p13 = pnand %p551_p12, %p545_p9 }
 0x1af   :  { %555 = shalt.err (!%p552_p13)
}
 0x1b0   :  { %s556_s25 = scalar_lea.hbm %s910_s17, 16 }
 0x1b1   :  { %p557_p0 = scmp.ne.s32.totalorder %s910_s17, %s556_s25  ;;  %p560_p1 = scmp.lt.u32.totalorder %s556_s25, %s910_s17 }
 0x1b3   :  { %p562_p2 = pnand %p560_p1, %p557_p0 }
 0x1b5   :  { %565 = shalt.err (!%p562_p2)
}
 0x1b6   :  { %355 = dma.vmem_to_hbm [thread:$0]  %s353_s11, 16, %s910_s17, [#allocation7]  }
 0x1b7   :  { %568 = dma.done.wait [#allocation3], 16  }
 0x1b8   :  { %569 = vsyncadd [#allocation3], 4294967280 }
 0x1b9   :  { %570 = dma.done.wait [#allocation7], 32  }
 0x1ba   :  { %571 = vsyncadd [#allocation7], 4294967264 }
 0x1bb   :  { %572 = dma.done.wait [#allocation10], 32  }
 0x1bc   :  { %573 = vsyncadd [#allocation10], 4294967264 }
 0x1bd   :  { %395 = vsyncpa [#allocation3], 1 }
 0x1be   :  { %396 = vsyncpa [#allocation7], 1 }
 0x1bf   :  { %397 = vsyncpa [#allocation10], 1 }
 0x1c0   :  { %398 = vsyncpa [#allocation4], 1 }

// kernel: _forward_impl.2
= control target key start
LH: loop header
LB: loop body
LE: loop exit
PB: predicated region body
PF: predicated region fallthrough
CT: control target
= control target key end

     0   :  { %v196_v41 = vlaneseq  ;;  %s888_s0 = inlined_call_operand.vmem [shape: f32[128,128], index: 0, kind: input, shape index: {}]   ;;  %s889_s4 = inlined_call_operand.vmem [shape: f32[1,128], index: 4, kind: output, shape index: {2}]   ;;  %s890_s1 = inlined_call_operand.vmem [shape: f32[128,128], index: 1, kind: input, shape index: {}]   ;;  %s891_s2 = inlined_call_operand.vmem [shape: f32[1,128], index: 2, kind: output, shape index: {0}]   ;;  %s892_s3 = inlined_call_operand.vmem [shape: f32[1,128], index: 3, kind: output, shape index: {1}]  }
   0x1   :  { %v538_v0 = vld [vmem:[%s888_s0] sm:$0xff]  ;;  %v543_v1 = vld [vmem:[%s888_s0 + $0x8] sm:$0xff]  ;;  %v548_v2 = vld [vmem:[%s888_s0 + $0x10] sm:$0xff] }
   0x2   :  { %v460_v3 = vpack.c.bf16 %v543_v1, %v538_v0  ;;  %v555_v4 = vld [vmem:[%s888_s0 + $0x18] sm:$0xff]  ;;  %v562_v6 = vld [vmem:[%s888_s0 + $0x20] sm:$0xff]  ;;  %v567_v7 = vld [vmem:[%s888_s0 + $0x28] sm:$0xff]  ;;  %v683_v42 = vshrl.u32 %v196_v41, 7  ;;  %v688_v44 = vand.u32 127, %v196_v41 }
   0x3   :  { %v464_v5 = vpack.c.bf16 %v555_v4, %v548_v2  ;;  %v572_v8 = vld [vmem:[%s888_s0 + $0x30] sm:$0xff]  ;;  %v468_v10 = vpack.c.bf16 %v567_v7, %v562_v6  ;;  %v30_v11 = vld [vmem:[%s890_s1] sm:$0xff]  ;;  %v586_v12 = vld [vmem:[%s888_s0 + $0x38] sm:$0xff] }
   0x4   :  { %461 = vmatprep.subr.bf16.mxu0 %v460_v3  ;;  %v358_v9 = vsub.f32 0.0, %v572_v8  ;;  %492 = vmatprep.subr.bf16.mxu1 %v460_v3  ;;  %v38_v13 = vld [vmem:[%s890_s1 + $0x40] sm:$0xff]  ;;  %v472_v14 = vpack.c.bf16 %v586_v12, %v572_v8  ;;  %v601_v16 = vld [vmem:[%s888_s0 + $0x48] sm:$0xff]  ;;  %v608_v18 = vld [vmem:[%s888_s0 + $0x50] sm:$0xff]  ;;  %v686_v43 = vadd.s32 8, %v683_v42  ;;  %vm216_vm1 = vcmp.eq.s32.totalorder %v683_v42, %v688_v44 }
   0x5   :  { %463 = vmatpush3.bf16.msra.mxu0 %v460_v3  ;;  %500 = vmatpush3.bf16.msra.mxu1 %v460_v3  ;;  %v596_v15 = vld [vmem:[%s888_s0 + $0x40] sm:$0xff]  ;;  %v613_v19 = vld [vmem:[%s888_s0 + $0x58] sm:$0xff]  ;;  %v625_v22 = vld [vmem:[%s888_s0 + $0x68] sm:$0xff]  ;;  %v699_v46 = vadd.s32 24, %v683_v42  ;;  %v316_v47 = vsel %vm216_vm1, %v538_v0, 0.0  ;;  %v706_v48 = vadd.s32 16, %v683_v42 }
   0x6   :  { %465 = vmatprep.subr.bf16.mxu0 %v464_v5  ;;  %359 = vst [vmem:[%s889_s4] sm:$0x1] %v358_v9  ;;  %493 = vmatprep.subr.bf16.mxu1 %v464_v5  ;;  %v476_v17 = vpack.c.bf16 %v601_v16, %v596_v15  ;;  %v480_v20 = vpack.c.bf16 %v613_v19, %v608_v18  ;;  %v620_v21 = vld [vmem:[%s888_s0 + $0x60] sm:$0xff]  ;;  %v632_v24 = vld [vmem:[%s888_s0 + $0x70] sm:$0xff]  ;;  %v637_v25 = vld [vmem:[%s888_s0 + $0x78] sm:$0xff]  ;;  %v721_v52 = vadd.s32 40, %v683_v42  ;;  %v724_v54 = vadd.s32 32, %v683_v42 }
   0x7   :  { %436 = vmatprep.mubr.f32.mxu0 %v30_v11  ;;  %448 = vmatprep.mubr.f32.mxu1 %v38_v13  ;;  %v484_v23 = vpack.c.bf16 %v625_v22, %v620_v21  ;;  %v488_v26 = vpack.c.bf16 %v637_v25, %v632_v24  ;;  %v31_v27 = vld [vmem:[%s890_s1 + $0x8] sm:$0xff]  ;;  %v32_v29 = vld [vmem:[%s890_s1 + $0x10] sm:$0xff]  ;;  %v33_v31 = vld [vmem:[%s890_s1 + $0x18] sm:$0xff]  ;;  %vm217_vm0 = vcmp.eq.s32.totalorder %v686_v43, %v688_v44  ;;  %v739_v58 = vadd.s32 56, %v683_v42 }
   0x8   :  { %v39_v28 = vld [vmem:[%s890_s1 + $0x48] sm:$0xff]  ;;  %v40_v30 = vld [vmem:[%s890_s1 + $0x50] sm:$0xff]  ;;  %v41_v32 = vld [vmem:[%s890_s1 + $0x58] sm:$0xff]  ;;  %v317_v45 = vsel %vm217_vm0, %v543_v1, 0.0  ;;  %vm219_vm2 = vcmp.eq.s32.totalorder %v699_v46, %v688_v44  ;;  %vm218_vm3 = vcmp.eq.s32.totalorder %v706_v48, %v688_v44  ;;  %vm221_vm4 = vcmp.eq.s32.totalorder %v721_v52, %v688_v44 }
   0x9   :  { %467 = vmatpush3.bf16.msra.mxu0 %v464_v5  ;;  %501 = vmatpush3.bf16.msra.mxu1 %v464_v5  ;;  %v34_v33 = vld [vmem:[%s890_s1 + $0x20] sm:$0xff]  ;;  %v35_v35 = vld [vmem:[%s890_s1 + $0x28] sm:$0xff]  ;;  %v36_v37 = vld [vmem:[%s890_s1 + $0x30] sm:$0xff]  ;;  %v332_v49 = vadd.f32 %v317_v45, %v316_v47  ;;  %v319_v50 = vsel %vm219_vm2, %v555_v4, 0.0  ;;  %v318_v51 = vsel %vm218_vm3, %v548_v2, 0.0  ;;  %vm220_vm5 = vcmp.eq.s32.totalorder %v724_v54, %v688_v44 }
   0xa   :  { %469 = vmatprep.subr.bf16.mxu0 %v468_v10  ;;  %494 = vmatprep.subr.bf16.mxu1 %v468_v10  ;;  %v42_v34 = vld [vmem:[%s890_s1 + $0x60] sm:$0xff]  ;;  %v43_v36 = vld [vmem:[%s890_s1 + $0x68] sm:$0xff]  ;;  %v44_v38 = vld [vmem:[%s890_s1 + $0x70] sm:$0xff]  ;;  %v321_v56 = vsel %vm221_vm4, %v567_v7, 0.0  ;;  %v320_v57 = vsel %vm220_vm5, %v562_v6, 0.0  ;;  %v742_v60 = vadd.s32 48, %v683_v42  ;;  %vm223_vm6 = vcmp.eq.s32.totalorder %v739_v58, %v688_v44 }
   0xb   :  { %v37_v39 = vld [vmem:[%s890_s1 + $0x38] sm:$0xff]  ;;  %v333_v53 = vadd.f32 %v332_v49, %v318_v51  ;;  %v323_v62 = vsel %vm223_vm6, %v586_v12, 0.0  ;;  %v757_v0 = vadd.s32 72, %v683_v42  ;;  %v760_v1 = vadd.s32 64, %v683_v42 }
   0xc   :  { %v45_v40 = vld [vmem:[%s890_s1 + $0x78] sm:$0xff]  ;;  %vm222_vm7 = vcmp.eq.s32.totalorder %v742_v60, %v688_v44  ;;  %v775_v6 = vadd.s32 88, %v683_v42  ;;  %v778_v7 = vadd.s32 80, %v683_v42  ;;  %v793_v12 = vadd.s32 104, %v683_v42 }
   0xd   :  { %471 = vmatpush3.bf16.msra.mxu0 %v468_v10  ;;  %502 = vmatpush3.bf16.msra.mxu1 %v468_v10  ;;  %v334_v55 = vadd.f32 %v333_v53, %v319_v50  ;;  %v322_v63 = vsel %vm222_vm7, %v572_v8, 0.0  ;;  %vm224_vm8 = vcmp.eq.s32.totalorder %v760_v1, %v688_v44  ;;  %vm225_vm9 = vcmp.eq.s32.totalorder %v757_v0, %v688_v44 }
   0xe   :  { %473 = vmatprep.subr.bf16.mxu0 %v472_v14  ;;  %495 = vmatprep.subr.bf16.mxu1 %v472_v14  ;;  %v325_v4 = vsel %vm225_vm9, %v601_v16, 0.0  ;;  %v324_v5 = vsel %vm224_vm8, %v596_v15, 0.0  ;;  %vm226_vm10 = vcmp.eq.s32.totalorder %v778_v7, %v688_v44  ;;  %vm227_vm11 = vcmp.eq.s32.totalorder %v775_v6, %v688_v44 }
   0xf   :  { %v335_v59 = vadd.f32 %v334_v55, %v320_v57  ;;  %v327_v10 = vsel %vm227_vm11, %v613_v19, 0.0  ;;  %v326_v11 = vsel %vm226_vm10, %v608_v18, 0.0  ;;  %v796_v13 = vadd.s32 96, %v683_v42 }
  0x10   :  { %vm229_vm13 = vcmp.eq.s32.totalorder %v793_v12, %v688_v44  ;;  %v811_v18 = vadd.s32 120, %v683_v42  ;;  %v814_v19 = vadd.s32 112, %v683_v42 }
  0x11   :  { %475 = vmatpush3.bf16.msra.mxu0 %v472_v14  ;;  %503 = vmatpush3.bf16.msra.mxu1 %v472_v14  ;;  %v336_v61 = vadd.f32 %v335_v59, %v321_v56  ;;  %vm228_vm12 = vcmp.eq.s32.totalorder %v796_v13, %v688_v44  ;;  %v329_v16 = vsel %vm229_vm13, %v625_v22, 0.0 }
  0x12   :  { %477 = vmatprep.subr.bf16.mxu0 %v476_v17  ;;  %496 = vmatprep.subr.bf16.mxu1 %v476_v17  ;;  %vm230_vm14 = vcmp.eq.s32.totalorder %v814_v19, %v688_v44  ;;  %vm231_vm15 = vcmp.eq.s32.totalorder %v811_v18, %v688_v44 }
  0x13   :  { %v337_v2 = vadd.f32 %v336_v61, %v322_v63 }
  0x15   :  { %479 = vmatpush3.bf16.msra.mxu0 %v476_v17  ;;  %504 = vmatpush3.bf16.msra.mxu1 %v476_v17  ;;  %v338_v3 = vadd.f32 %v337_v2, %v323_v62  ;;  %v328_v17 = vsel %vm228_vm12, %v620_v21, 0.0  ;;  %v331_v21 = vsel %vm231_vm15, %v637_v25, 0.0 }
  0x16   :  { %481 = vmatprep.subr.bf16.mxu0 %v480_v20  ;;  %497 = vmatprep.subr.bf16.mxu1 %v480_v20 }
  0x17   :  { %v339_v8 = vadd.f32 %v338_v3, %v324_v5 }
  0x19   :  { %483 = vmatpush3.bf16.msra.mxu0 %v480_v20  ;;  %505 = vmatpush3.bf16.msra.mxu1 %v480_v20  ;;  %v340_v9 = vadd.f32 %v339_v8, %v325_v4 }
  0x1a   :  { %485 = vmatprep.subr.bf16.mxu0 %v484_v23  ;;  %498 = vmatprep.subr.bf16.mxu1 %v484_v23 }
  0x1b   :  { %v341_v14 = vadd.f32 %v340_v9, %v326_v11 }
  0x1d   :  { %487 = vmatpush3.bf16.msra.mxu0 %v484_v23  ;;  %506 = vmatpush3.bf16.msra.mxu1 %v484_v23  ;;  %v342_v15 = vadd.f32 %v341_v14, %v327_v10  ;;  %v509_v23 = vmov 0.0  }
  0x1e   :  { %489 = vmatprep.subr.bf16.mxu0 %v488_v26  ;;  %499 = vmatprep.subr.bf16.mxu1 %v488_v26  ;;  %50 = vst [vmem:[%s891_s2] sm:$0x1] %v509_v23 }
  0x1f   :  { %v343_v20 = vadd.f32 %v342_v15, %v328_v17 }
  0x21   :  { %491 = vmatpush3.bf16.msra.mxu0 %v488_v26  ;;  %507 = vmatpush3.bf16.msra.mxu1 %v488_v26  ;;  %v344_v22 = vadd.f32 %v343_v20, %v329_v16  ;;  %v330_v26 = vsel %vm230_vm14, %v632_v24, 0.0 }
  0x24   :  { %437 = vmatmul.mubr.f32.vlgmr.msra.gmra.mrb[0].mxu0 %v31_v27  ;;  %449 = vmatmul.mubr.f32.vlgmr.msra.gmra.mrb[0].mxu1 %v39_v28  ;;  %v345_v27 = vadd.f32 %v344_v22, %v330_v26 }
  0x25   :  { %439 = vmatprep.mubr.f32.mxu0 %v32_v29  ;;  %451 = vmatprep.mubr.f32.mxu1 %v40_v30  ;;  %v215_v12 = vld [vmem:[%s891_s2] sm:$0x1] }
  0x26   :  { %v346_v28 = vadd.f32 %v345_v27, %v331_v21 }
  0x28   :  { %440 = vmatmul.mubr.f32.gmra.mrb[2].mxu0 %v33_v31  ;;  %452 = vmatmul.mubr.f32.gmra.mrb[2].mxu1 %v41_v32  ;;  %v347_v29 = vrot.slane %v346_v28, 4 }
  0x29   :  { %442 = vmatprep.mubr.f32.mxu0 %v34_v33  ;;  %454 = vmatprep.mubr.f32.mxu1 %v42_v34 }
  0x2a   :  { %v348_v30 = vadd.f32 %v347_v29, %v346_v28 }
  0x2c   :  { %443 = vmatmul.mubr.f32.gmra.mrb[4].mxu0 %v35_v35  ;;  %455 = vmatmul.mubr.f32.gmra.mrb[4].mxu1 %v43_v36  ;;  %v349_v31 = vrot.slane %v348_v30, 2 }
  0x2d   :  { %445 = vmatprep.mubr.f32.mxu0 %v36_v37  ;;  %457 = vmatprep.mubr.f32.mxu1 %v44_v38 }
  0x2e   :  { %v350_v32 = vadd.f32 %v349_v31, %v348_v30 }
  0x30   :  { %446 = vmatmul.mubr.f32.gmra.mrb[6].mxu0 %v37_v39  ;;  %458 = vmatmul.mubr.f32.gmra.mrb[6].mxu1 %v45_v40  ;;  %v351_v33 = vrot.slane %v350_v32, 1 }
  0x32   :  { %v352_v34 = vadd.f32 %v351_v33, %v350_v32 }
  0x34   :  { %v353_v35 = vsub.f32 0.0, %v352_v34 }
  0x36   :  { %354 = vst [vmem:[%s892_s3] sm:$0x1] %v353_v35 }
  0xf7   :  { %v438_v36 = vpop.f32.mrb[0].mxu0  ;;  %v450_v25 = vpop.f32.mrb[0].mxu1 }
  0xf8   :  { %v233_v37 = vsel %vm217_vm0, %v438_v36, 0.0  ;;  %v117_v24 = vpop.f32.mrb[1].mxu0  ;;  %v157_v38 = vpop.f32.mrb[1].mxu1  ;;  %v241_v10 = vsel %vm225_vm9, %v450_v25, 0.0 }
  0xf9   :  { %v232_v39 = vsel %vm216_vm1, %v117_v24, 0.0  ;;  %v240_v8 = vsel %vm224_vm8, %v157_v38, 0.0 }
  0xfa   :  { %v248_v40 = vadd.f32 %v233_v37, %v232_v39 }
  0xfb   :  { %v441_v41 = vpop.f32.mrb[2].mxu0  ;;  %v453_v45 = vpop.f32.mrb[2].mxu1 }
  0xfc   :  { %v127_v47 = vpop.f32.mrb[3].mxu0  ;;  %v167_v49 = vpop.f32.mrb[3].mxu1  ;;  %v235_v43 = vsel %vm219_vm2, %v441_v41, 0.0  ;;  %v243_v58 = vsel %vm227_vm11, %v453_v45, 0.0 }
  0xfd   :  { %v234_v50 = vsel %vm218_vm3, %v127_v47, 0.0  ;;  %v242_v60 = vsel %vm226_vm10, %v167_v49, 0.0 }
  0xfe   :  { %v249_v51 = vadd.f32 %v248_v40, %v234_v50 }
  0xff   :  { %v444_v53 = vpop.f32.mrb[4].mxu0  ;;  %v456_v55 = vpop.f32.mrb[4].mxu1 }
 0x100   :  { %v137_v56 = vpop.f32.mrb[5].mxu0  ;;  %v250_v57 = vadd.f32 %v249_v51, %v235_v43  ;;  %v177_v42 = vpop.f32.mrb[5].mxu1  ;;  %v237_v48 = vsel %vm221_vm4, %v444_v53, 0.0  ;;  %v245_v0 = vsel %vm229_vm13, %v456_v55, 0.0 }
 0x101   :  { %v236_v59 = vsel %vm220_vm5, %v137_v56, 0.0  ;;  %v244_v1 = vsel %vm228_vm12, %v177_v42, 0.0 }
 0x102   :  { %v251_v61 = vadd.f32 %v250_v57, %v236_v59 }
 0x103   :  { %v447_v62 = vpop.f32.mrb[6].mxu0  ;;  %v459_v63 = vpop.f32.mrb[6].mxu1 }
 0x104   :  { %v147_v2 = vpop.f32.mrb[7].mxu0  ;;  %v252_v3 = vadd.f32 %v251_v61, %v237_v48  ;;  %v187_v46 = vpop.f32.mrb[7].mxu1  ;;  %v239_v54 = vsel %vm223_vm6, %v447_v62, 0.0  ;;  %v247_v6 = vsel %vm231_vm15, %v459_v63, 0.0 }
 0x105   :  { %v238_v4 = vsel %vm222_vm7, %v147_v2, 0.0  ;;  %v246_v7 = vsel %vm230_vm14, %v187_v46, 0.0 }
 0x106   :  { %v253_v5 = vadd.f32 %v252_v3, %v238_v4 }
 0x108   :  { %v254_v52 = vadd.f32 %v253_v5, %v239_v54 }
 0x10a   :  { %v255_v9 = vadd.f32 %v254_v52, %v240_v8 }
 0x10c   :  { %v256_v11 = vadd.f32 %v255_v9, %v241_v10 }
 0x10e   :  { %v257_v14 = vadd.f32 %v256_v11, %v242_v60 }
 0x110   :  { %v258_v15 = vadd.f32 %v257_v14, %v243_v58 }
 0x112   :  { %v259_v16 = vadd.f32 %v258_v15, %v244_v1 }
 0x114   :  { %v260_v17 = vadd.f32 %v259_v16, %v245_v0 }
 0x116   :  { %v261_v20 = vadd.f32 %v260_v17, %v246_v7 }
 0x118   :  { %v262_v23 = vadd.f32 %v261_v20, %v247_v6 }
 0x11a   :  { %v263_v22 = vrot.slane %v262_v23, 4 }
 0x11c   :  { %v264_v13 = vadd.f32 %v263_v22, %v262_v23 }
 0x11e   :  { %v265_v21 = vrot.slane %v264_v13, 2 }
 0x120   :  { %v266_v26 = vadd.f32 %v265_v21, %v264_v13 }
 0x122   :  { %v267_v27 = vrot.slane %v266_v26, 1 }
 0x124   :  { %v268_v28 = vadd.f32 %v267_v27, %v266_v26 }
 0x126   :  { %v269_v29 = vadd.f32 %v268_v28, %v215_v12 }
 0x128   :  { %270 = vst [vmem:[%s891_s2] sm:$0x1] %v269_v29 }

</bundles_post_ra>
